<compile_context>
chip_gen: v6e
topology: v6e:2x2x1
jax: 0.10.0
libtpu: 0.0.40
codegen_flags: <defaults>
</compile_context>

<pallas_src>
import math

import jax
import jax.numpy as jnp
import numpy as np
from jax import lax
from jax.experimental import pallas as pl
from jax.experimental.pallas import tpu as pltpu


# -----------------------------------------------------------------------------
# Stage 1: fused input projections.
# -----------------------------------------------------------------------------
def _make_proj_kernel(scale: float):
    def kernel(q_ref, k_ref, v_ref, wq_ref, wk_ref, qw_ref, kw_ref, vw_ref):
        wq = wq_ref[...]                       # (H, H) bf16, already transposed
        wk = wk_ref[...]
        # bf16 operands straight into the MXU, accumulate in f32.
        qw = jnp.dot(q_ref[...], wq, preferred_element_type=jnp.float32) * scale
        kw = jnp.dot(k_ref[...], wk, preferred_element_type=jnp.float32)
        # Reference "bug" reproduced: V is projected with K_linear's weight.
        vw = jnp.dot(v_ref[...], wk, preferred_element_type=jnp.float32)
        qw_ref[...] = qw.astype(qw_ref.dtype)
        kw_ref[...] = kw.astype(kw_ref.dtype)
        vw_ref[...] = vw.astype(vw_ref.dtype)

    return kernel


# -----------------------------------------------------------------------------
# Stage 2: flash-style multi-head attention + fused output projection.
# -----------------------------------------------------------------------------
def _make_attn_kernel(n_splits: int, dh: int):
    def kernel(qw_ref, kw_ref, vw_ref, wo_ref, o_ref, m_sc, l_sc, acc_sc):
        kv = pl.program_id(2)

        @pl.when(kv == 0)
        def _init():
            m_sc[...] = jnp.full_like(m_sc, -jnp.inf)
            l_sc[...] = jnp.zeros_like(l_sc)
            acc_sc[...] = jnp.zeros_like(acc_sc)

        q = qw_ref[...]        # (Tq,  H) bf16 — 1/sqrt(dh) already folded in
        k = kw_ref[...]        # (Tkv, H) bf16
        v = vw_ref[...]        # (Tkv, H) bf16

        # Static loop over heads; each head lives at lane offset h*dh.
        for h in range(n_splits):
            lo = h * dh
            qh = q[:, lo:lo + dh]                       # (Tq,  dh)
            kh = k[:, lo:lo + dh]                       # (Tkv, dh)
            vh = v[:, lo:lo + dh]                       # (Tkv, dh)
            # Contract on the last dims of both operands: no transpose of kh.
            s = lax.dot_general(qh, kh, (((1,), (1,)), ((), ())),
                                preferred_element_type=jnp.float32)  # (Tq,Tkv)
            m_prev = m_sc[h]                                         # (Tq, 1)
            m_new = jnp.maximum(m_prev, jnp.max(s, axis=-1, keepdims=True))
            alpha = jnp.exp(m_prev - m_new)
            p = jnp.exp(s - m_new)                                   # f32
            l_sc[h] = alpha * l_sc[h] + jnp.sum(p, axis=-1, keepdims=True)
            acc_sc[:, lo:lo + dh] = (
                alpha * acc_sc[:, lo:lo + dh]
                + jnp.dot(p.astype(v.dtype), vh,
                          preferred_element_type=jnp.float32))
            m_sc[h] = m_new

        @pl.when(kv == pl.num_programs(2) - 1)
        def _finalize():
            # Normalize each head in-place, then one lane-dense (Tq,H)@(H,H).
            for h in range(n_splits):
                lo = h * dh
                inv_l = pl.reciprocal(l_sc[h], approx=True)   # EUP slot, ~free
                acc_sc[:, lo:lo + dh] = acc_sc[:, lo:lo + dh] * inv_l
            ctx = acc_sc[...].astype(wo_ref.dtype)            # (Tq, H) bf16
            out = jnp.dot(ctx, wo_ref[...],
                          preferred_element_type=jnp.float32)
            o_ref[...] = out.astype(o_ref.dtype)

    return kernel


def _pick_seq_tile(s: int, max_tile: int) -> int:
    """Largest divisor of s that is <= max_tile and sublane-aligned."""
    if s <= max_tile:
        return s
    for t in range(max_tile, 7, -1):
        if s % t == 0 and t % 8 == 0:
            return t
    return s


def multihead_forward(Q, K, V, wq, wk, wv, wo, n_splits,
                      *, q_tile=128, kv_tile=256,
                      compute_dtype=jnp.bfloat16):
    """Pallas implementation of MultiHead.forward (mask=None path).

    Q, K, V: (B, S, H).  wq/wk/wv/wo: (H, H) PyTorch Linear weights
    (y = x @ W^T).  wv is accepted for interface parity but unused because the
    reference module applies K_linear to V.
    """
    del wv  # unused by the reference forward pass (uses K_linear for V)
    B, S, H = Q.shape
    assert H % n_splits == 0
    dh = H // n_splits
    scale = 1.0 / math.sqrt(dh)
    out_dtype = Q.dtype
    itemsize = jnp.dtype(compute_dtype).itemsize
    out_itemsize = jnp.dtype(out_dtype).itemsize

    # bf16 matmul operands: 2x MXU rate on v6e/v7x, half the HBM<->VMEM bytes.
    q2 = Q.reshape(B * S, H).astype(compute_dtype)
    k2 = K.reshape(B * S, H).astype(compute_dtype)
    v2 = V.reshape(B * S, H).astype(compute_dtype)
    wq_t = wq.T.astype(compute_dtype)
    wk_t = wk.T.astype(compute_dtype)
    wo_t = wo.T.astype(compute_dtype)

    # ----------------------- projection kernel -----------------------
    M = B * S
    tm = M if M <= 256 else 256                        # feed the 256-wide MXU
    row_spec = pl.BlockSpec((tm, H), lambda i: (i, 0))
    w_spec = pl.BlockSpec((H, H), lambda i: (0, 0))
    proj_vmem = 2 * 6 * tm * H * itemsize + 2 * 2 * H * H * itemsize

    qw, kw, vw = pl.pallas_call(
        _make_proj_kernel(scale),
        out_shape=(jax.ShapeDtypeStruct((M, H), compute_dtype),) * 3,
        grid_spec=pltpu.PrefetchScalarGridSpec(
            num_scalar_prefetch=0,
            grid=(pl.cdiv(M, tm),),
            in_specs=[row_spec, row_spec, row_spec, w_spec, w_spec],
            out_specs=[row_spec, row_spec, row_spec],
        ),
        compiler_params=pltpu.CompilerParams(
            dimension_semantics=("parallel",),
            vmem_limit_bytes=int(max(16 << 20, 2 * proj_vmem))),
    )(q2, k2, v2, wq_t, wk_t)

    qw = qw.reshape(B, S, H)
    kw = kw.reshape(B, S, H)
    vw = vw.reshape(B, S, H)

    # --------------- attention + output projection kernel ---------------
    Tq = _pick_seq_tile(S, q_tile)
    Tkv = _pick_seq_tile(S, kv_tile)
    n_q = S // Tq
    n_kv = S // Tkv

    attn_vmem = (2 * (Tq * H + 2 * Tkv * H) * itemsize   # double-buffered inputs
                 + 2 * H * H * itemsize                   # Wo^T
                 + 2 * Tq * H * out_itemsize              # output blocks
                 + (Tq * H + 2 * n_splits * Tq * 128) * 4)  # f32 scratch (padded)

    out = pl.pallas_call(
        _make_attn_kernel(n_splits, dh),
        out_shape=jax.ShapeDtypeStruct((B, S, H), out_dtype),
        grid_spec=pltpu.PrefetchScalarGridSpec(
            num_scalar_prefetch=0,
            grid=(B, n_q, n_kv),                          # reduction axis last
            in_specs=[
                pl.BlockSpec((None, Tq, H), lambda b, qi, kv: (b, qi, 0)),
                pl.BlockSpec((None, Tkv, H), lambda b, qi, kv: (b, kv, 0)),
                pl.BlockSpec((None, Tkv, H), lambda b, qi, kv: (b, kv, 0)),
                pl.BlockSpec((H, H), lambda b, qi, kv: (0, 0)),
            ],
            out_specs=pl.BlockSpec((None, Tq, H), lambda b, qi, kv: (b, qi, 0)),
            scratch_shapes=[
                pltpu.VMEM((n_splits, Tq, 1), jnp.float32),   # running max m
                pltpu.VMEM((n_splits, Tq, 1), jnp.float32),   # running denom l
                pltpu.VMEM((Tq, H), jnp.float32),             # context accum
            ],
        ),
        compiler_params=pltpu.CompilerParams(
            dimension_semantics=("parallel", "parallel", "arbitrary"),
            vmem_limit_bytes=int(max(16 << 20, 1.5 * attn_vmem))),
    )(qw, kw, vw, wo_t)

    return out


def multihead_reference(Q, K, V, wq, wk, wv, wo, n_splits):
    """Pure-JAX (f32) transcription of the PyTorch forward, for verification."""
    del wv
    B, S, H = Q.shape
    dh = H // n_splits
    qw = Q @ wq.T
    kw = K @ wk.T
    vw = V @ wk.T  # reference bug reproduced
    qws = jnp.concatenate(jnp.split(qw, n_splits, axis=-1), axis=0)
    kws = jnp.concatenate(jnp.split(kw, n_splits, axis=-1), axis=0)
    vws = jnp.concatenate(jnp.split(vw, n_splits, axis=-1), axis=0)
    w = jnp.einsum('bqd,bkd->bqk', qws, kws) / (dh ** 0.5)
    w = jax.nn.softmax(w, axis=-1)
    c = jnp.einsum('bqk,bkd->bqd', w, vws)
    c = jnp.concatenate(jnp.split(c, n_splits, axis=0), axis=-1)  # (B, S, H)
    return c @ wo.T


if __name__ == "__main__":
    B, S, H, n_splits = 2, 8, 32, 4

    key = jax.random.PRNGKey(0)
    kq, kk, kvv, kwq, kwk, kwv, kwo = jax.random.split(key, 7)

    Q = jax.random.normal(kq, (B, S, H), dtype=jnp.float32)
    K = jax.random.normal(kk, (B, S, H), dtype=jnp.float32)
    V = jax.random.normal(kvv, (B, S, H), dtype=jnp.float32)

    # Deterministic Linear(H, H, bias=False) weights, U(-1/sqrt(H), 1/sqrt(H)).
    bound = 1.0 / math.sqrt(H)
    wq = jax.random.uniform(kwq, (H, H), jnp.float32, -bound, bound)
    wk = jax.random.uniform(kwk, (H, H), jnp.float32, -bound, bound)
    wv = jax.random.uniform(kwv, (H, H), jnp.float32, -bound, bound)  # unused by fwd
    wo = jax.random.uniform(kwo, (H, H), jnp.float32, -bound, bound)

    out = multihead_forward(Q, K, V, wq, wk, wv, wo, n_splits)
    out = jax.block_until_ready(out)

    ref = multihead_reference(Q, K, V, wq, wk, wv, wo, n_splits)
    # bf16 matmul operands + approx reciprocal => looser tolerance vs f32 ref.
    err = float(jnp.max(jnp.abs(out.astype(jnp.float32) - ref)))
    np.testing.assert_allclose(np.asarray(out), np.asarray(ref),
                               rtol=5e-2, atol=5e-2)

    print("KERNEL_OK")
</pallas_src>

<mosaic_0001>
module attributes {stable_mosaic.version = 11 : i64} {
  func.func @kernel(%arg0: i32, %arg1: memref<16x32xbf16, #tpu.memory_space<vmem>>, %arg2: memref<16x32xbf16, #tpu.memory_space<vmem>>, %arg3: memref<16x32xbf16, #tpu.memory_space<vmem>>, %arg4: memref<32x32xbf16, #tpu.memory_space<vmem>>, %arg5: memref<32x32xbf16, #tpu.memory_space<vmem>>, %arg6: memref<16x32xbf16, #tpu.memory_space<vmem>>, %arg7: memref<16x32xbf16, #tpu.memory_space<vmem>>, %arg8: memref<16x32xbf16, #tpu.memory_space<vmem>>) attributes {dimension_semantics = [#tpu.dimension_semantics<parallel>], iteration_bounds = array<i64: 1>, scalar_prefetch = 0 : i64, scratch_operands = 0 : i64, tpu.core_type = #tpu.core_type<tc>, window_params = [{transform_indices = @transform_0, window_bounds = array<i64: 16, 32>}, {transform_indices = @transform_1, window_bounds = array<i64: 16, 32>}, {transform_indices = @transform_2, window_bounds = array<i64: 16, 32>}, {pipeline_mode = #tpu.pipeline_mode<synchronous>, transform_indices = @transform_3, window_bounds = array<i64: 32, 32>}, {pipeline_mode = #tpu.pipeline_mode<synchronous>, transform_indices = @transform_4, window_bounds = array<i64: 32, 32>}, {transform_indices = @transform_5, window_bounds = array<i64: 16, 32>}, {transform_indices = @transform_6, window_bounds = array<i64: 16, 32>}, {transform_indices = @transform_7, window_bounds = array<i64: 16, 32>}]} {
    %c0 = arith.constant 0 : index
    %c0_0 = arith.constant 0 : index
    %0 = vector.load %arg4[%c0, %c0_0] : memref<32x32xbf16, #tpu.memory_space<vmem>>, vector<32x32xbf16>
    %c0_1 = arith.constant 0 : index
    %c0_2 = arith.constant 0 : index
    %1 = vector.load %arg5[%c0_1, %c0_2] : memref<32x32xbf16, #tpu.memory_space<vmem>>, vector<32x32xbf16>
    %c0_3 = arith.constant 0 : index
    %c0_4 = arith.constant 0 : index
    %2 = vector.load %arg1[%c0_3, %c0_4] : memref<16x32xbf16, #tpu.memory_space<vmem>>, vector<16x32xbf16>
    %cst = arith.constant dense<0.000000e+00> : vector<16x32xf32>
    %3 = tpu.matmul %2, %0, %cst {dimension_numbers = #tpu.dot_dimension_numbers<[1], [0], [0], [1], [0, 0, 1, 1], [], []>} : vector<16x32xbf16>, vector<32x32xbf16>, vector<16x32xf32> -> vector<16x32xf32>
    %cst_5 = arith.constant 0.353553385 : f32
    %4 = vector.broadcast %cst_5 : f32 to vector<16x32xf32>
    %5 = arith.mulf %3, %4 : vector<16x32xf32>
    %c0_6 = arith.constant 0 : index
    %c0_7 = arith.constant 0 : index
    %6 = vector.load %arg2[%c0_6, %c0_7] : memref<16x32xbf16, #tpu.memory_space<vmem>>, vector<16x32xbf16>
    %cst_8 = arith.constant dense<0.000000e+00> : vector<16x32xf32>
    %7 = tpu.matmul %6, %1, %cst_8 {dimension_numbers = #tpu.dot_dimension_numbers<[1], [0], [0], [1], [0, 0, 1, 1], [], []>} : vector<16x32xbf16>, vector<32x32xbf16>, vector<16x32xf32> -> vector<16x32xf32>
    %c0_9 = arith.constant 0 : index
    %c0_10 = arith.constant 0 : index
    %8 = vector.load %arg3[%c0_9, %c0_10] : memref<16x32xbf16, #tpu.memory_space<vmem>>, vector<16x32xbf16>
    %cst_11 = arith.constant dense<0.000000e+00> : vector<16x32xf32>
    %9 = tpu.matmul %8, %1, %cst_11 {dimension_numbers = #tpu.dot_dimension_numbers<[1], [0], [0], [1], [0, 0, 1, 1], [], []>} : vector<16x32xbf16>, vector<32x32xbf16>, vector<16x32xf32> -> vector<16x32xf32>
    %10 = arith.truncf %5 : vector<16x32xf32> to vector<16x32xbf16>
    %c0_12 = arith.constant 0 : index
    %c0_13 = arith.constant 0 : index
    %11 = vector.load %arg6[%c0_12, %c0_13] : memref<16x32xbf16, #tpu.memory_space<vmem>>, vector<16x32xbf16>
    tpu.vector_store %arg6[%c0_12, %c0_13], %10 {strides = array<i32>} : memref<16x32xbf16, #tpu.memory_space<vmem>>, vector<16x32xbf16>,
    %12 = arith.truncf %7 : vector<16x32xf32> to vector<16x32xbf16>
    %c0_14 = arith.constant 0 : index
    %c0_15 = arith.constant 0 : index
    %13 = vector.load %arg7[%c0_14, %c0_15] : memref<16x32xbf16, #tpu.memory_space<vmem>>, vector<16x32xbf16>
    tpu.vector_store %arg7[%c0_14, %c0_15], %12 {strides = array<i32>} : memref<16x32xbf16, #tpu.memory_space<vmem>>, vector<16x32xbf16>,
    %14 = arith.truncf %9 : vector<16x32xf32> to vector<16x32xbf16>
    %c0_16 = arith.constant 0 : index
    %c0_17 = arith.constant 0 : index
    %15 = vector.load %arg8[%c0_16, %c0_17] : memref<16x32xbf16, #tpu.memory_space<vmem>>, vector<16x32xbf16>
    tpu.vector_store %arg8[%c0_16, %c0_17], %14 {strides = array<i32>} : memref<16x32xbf16, #tpu.memory_space<vmem>>, vector<16x32xbf16>,
    return
  }
  func.func @transform_0(%arg0: i32) -> (i32, i32) {
    %c0_i32 = arith.constant 0 : i32
    %c0_i32_0 = arith.constant 0 : i32
    return %arg0, %c0_i32 : i32, i32
  }
  func.func @transform_1(%arg0: i32) -> (i32, i32) {
    %c0_i32 = arith.constant 0 : i32
    %c0_i32_0 = arith.constant 0 : i32
    return %arg0, %c0_i32 : i32, i32
  }
  func.func @transform_2(%arg0: i32) -> (i32, i32) {
    %c0_i32 = arith.constant 0 : i32
    %c0_i32_0 = arith.constant 0 : i32
    return %arg0, %c0_i32 : i32, i32
  }
  func.func @transform_3(%arg0: i32) -> (i32, i32) {
    %c0_i32 = arith.constant 0 : i32
    %c0_i32_0 = arith.constant 0 : i32
    %c0_i32_1 = arith.constant 0 : i32
    return %c0_i32, %c0_i32_0 : i32, i32
  }
  func.func @transform_4(%arg0: i32) -> (i32, i32) {
    %c0_i32 = arith.constant 0 : i32
    %c0_i32_0 = arith.constant 0 : i32
    %c0_i32_1 = arith.constant 0 : i32
    return %c0_i32, %c0_i32_0 : i32, i32
  }
  func.func @transform_5(%arg0: i32) -> (i32, i32) {
    %c0_i32 = arith.constant 0 : i32
    %c0_i32_0 = arith.constant 0 : i32
    return %arg0, %c0_i32 : i32, i32
  }
  func.func @transform_6(%arg0: i32) -> (i32, i32) {
    %c0_i32 = arith.constant 0 : i32
    %c0_i32_0 = arith.constant 0 : i32
    return %arg0, %c0_i32 : i32, i32
  }
  func.func @transform_7(%arg0: i32) -> (i32, i32) {
    %c0_i32 = arith.constant 0 : i32
    %c0_i32_0 = arith.constant 0 : i32
    return %arg0, %c0_i32 : i32, i32
  }
}

</mosaic_0001>

<bundles_post_ra>
// kernel: tpu_custom_call.1
= control target key start
LH: loop header
LB: loop body
LE: loop exit
PB: predicated region body
PF: predicated region fallthrough
CT: control target
= control target key end

     0   :  { %13 = vsyncpa [#allocation3], 0  ;;  %s716_s0 = inlined_call_operand.hbm [shape: bf16[16,32], index: 0, kind: input, shape index: {}]   ;;  %s717_s1 = inlined_call_operand.hbm [shape: bf16[16,32], index: 1, kind: input, shape index: {}]   ;;  %s718_s2 = inlined_call_operand.hbm [shape: bf16[16,32], index: 2, kind: input, shape index: {}]   ;;  %s719_s3 = inlined_call_operand.hbm [shape: bf16[32,32], index: 3, kind: input, shape index: {}]   ;;  %s720_s4 = inlined_call_operand.hbm [shape: bf16[32,32], index: 4, kind: input, shape index: {}]   ;;  %s721_s5 = inlined_call_operand.hbm [shape: bf16[16,32], index: 5, kind: output, shape index: {0}]   ;;  %s722_s6 = inlined_call_operand.hbm [shape: bf16[16,32], index: 6, kind: output, shape index: {1}]   ;;  %s723_s7 = inlined_call_operand.hbm [shape: bf16[16,32], index: 7, kind: output, shape index: {2}]  }
   0x1   :  { %14 = vsyncpa [#allocation6], 0 }
   0x2   :  { %15 = vsyncpa [#allocation9], 0 }
   0x3   :  { %16 = vsyncpa [#allocation4], 0 }
   0x4   :  { %17 = vsyncpa [#allocation13], 0  ;;  %s607_s24 = smov [#allocation5]   ;;  %s608_s26 = smov [#allocation8]  }
   0x5   :  { %s35_s25 = sshll.u32 %s607_s24, 4  ;;  %s59_s27 = sshll.u32 %s608_s26, 4  ;;  %s36_s25 = int_to_ptr.vmem [resolvable:$true] %s35_s25  ;;  %s60_s27 = int_to_ptr.vmem [resolvable:$true] %s59_s27 }
   0x6   :  { %s445_s28 = scalar_lea.vmem %s36_s25, 128  ;;  %p450_p1 = scmp.lt.s32.totalorder %s36_s25, %s36_s25 }
   0x7   :  { %p446_p0 = scmp.ne.s32.totalorder %s36_s25, %s445_s28  ;;  %p451_p2 = scmp.lt.s32.totalorder %s445_s28, %s445_s28 }
   0x9   :  { %p452_p3 = por %p451_p2, %p450_p1 }
   0xb   :  { %p453_p4 = pnand %p452_p3, %p446_p0 }
   0xd   :  { %456 = shalt.err (!%p453_p4)
}
   0xe   :  { %s609_s29 = smov 64   ;;  %s610_s30 = smov 4  }
   0xf   :  { %41 = dma.hbm_to_vmem [thread:$0]  %s717_s1, 128, %s36_s25, [#allocation6], %s609_s29, %s609_s29, %s610_s30  }
  0x10   :  { %s465_s10 = scalar_lea.vmem %s60_s27, 256  ;;  %p470_p6 = scmp.lt.s32.totalorder %s60_s27, %s60_s27 }
  0x11   :  { %p466_p5 = scmp.ne.s32.totalorder %s60_s27, %s465_s10  ;;  %p471_p7 = scmp.lt.s32.totalorder %s465_s10, %s465_s10 }
  0x13   :  { %p472_p8 = por %p471_p7, %p470_p6 }
  0x15   :  { %p473_p9 = pnand %p472_p8, %p466_p5 }
  0x17   :  { %476 = shalt.err (!%p473_p9)
}
  0x18   :  { %65 = dma.hbm_to_vmem [thread:$0]  %s719_s3, 256, %s60_s27, [#allocation9], %s609_s29, %s609_s29, %s610_s30  }
  0x19   :  { %s611_s13 = smov [#allocation2]   ;;  %s612_s15 = smov [#allocation7]  }
  0x1a   :  { %s23_s14 = sshll.u32 %s611_s13, 4  ;;  %s47_s16 = sshll.u32 %s612_s15, 4  ;;  %s24_s14 = int_to_ptr.vmem [resolvable:$true] %s23_s14  ;;  %s48_s16 = int_to_ptr.vmem [resolvable:$true] %s47_s16 }
  0x1b   :  { %s485_s1 = scalar_lea.vmem %s24_s14, 128  ;;  %p490_p11 = scmp.lt.s32.totalorder %s24_s14, %s24_s14 }
  0x1c   :  { %p486_p10 = scmp.ne.s32.totalorder %s24_s14, %s485_s1  ;;  %p491_p12 = scmp.lt.s32.totalorder %s485_s1, %s485_s1 }
  0x1e   :  { %p492_p13 = por %p491_p12, %p490_p11 }
  0x20   :  { %p493_p0 = pnand %p492_p13, %p486_p10 }
  0x22   :  { %496 = shalt.err (!%p493_p0)
}
  0x23   :  { %29 = dma.hbm_to_vmem [thread:$0]  %s716_s0, 128, %s24_s14, [#allocation3], %s609_s29, %s609_s29, %s610_s30  }
  0x24   :  { %s505_s3 = scalar_lea.vmem %s48_s16, 128  ;;  %p510_p2 = scmp.lt.s32.totalorder %s48_s16, %s48_s16 }
  0x25   :  { %p506_p1 = scmp.ne.s32.totalorder %s48_s16, %s505_s3  ;;  %p511_p3 = scmp.lt.s32.totalorder %s505_s3, %s505_s3 }
  0x27   :  { %p512_p4 = por %p511_p3, %p510_p2 }
  0x29   :  { %p513_p5 = pnand %p512_p4, %p506_p1 }
  0x2b   :  { %516 = shalt.err (!%p513_p5)
}
  0x2c   :  { %53 = dma.hbm_to_vmem [thread:$0]  %s718_s2, 128, %s48_s16, [#allocation6], %s609_s29, %s609_s29, %s610_s30  }
  0x2d   :  { %s613_s21 = smov [#allocation10]  }
  0x2e   :  { %s71_s22 = sshll.u32 %s613_s21, 4  ;;  %s72_s22 = int_to_ptr.vmem [resolvable:$true] %s71_s22 }
  0x2f   :  { %s525_s23 = scalar_lea.vmem %s72_s22, 256  ;;  %p530_p7 = scmp.lt.s32.totalorder %s72_s22, %s72_s22 }
  0x30   :  { %p526_p6 = scmp.ne.s32.totalorder %s72_s22, %s525_s23  ;;  %p531_p8 = scmp.lt.s32.totalorder %s525_s23, %s525_s23 }
  0x32   :  { %p532_p9 = por %p531_p8, %p530_p7 }
  0x34   :  { %p533_p10 = pnand %p532_p9, %p526_p6 }
  0x36   :  { %536 = shalt.err (!%p533_p10)
}
  0x37   :  { %77 = dma.hbm_to_vmem [thread:$0]  %s720_s4, 256, %s72_s22, [#allocation9], %s609_s29, %s609_s29, %s610_s30  }
  0x38   :  { %597 = dma.done.wait [#allocation3], 128  }
  0x39   :  { %598 = vsyncadd [#allocation3], 4294967168 }
  0x3a   :  { %599 = dma.done.wait [#allocation6], 256  }
  0x3b   :  { %600 = vsyncadd [#allocation6], 4294967040 }
  0x3c   :  { %601 = dma.done.wait [#allocation9], 512  }
  0x3d   :  { %602 = vsyncadd [#allocation9], 4294966784  ;;  %v614_v0 = vmov 0.0   ;;  %vm615_vm0 = vmmov 0   ;;  %v430_v1 = vld [vmem:[#allocation8 + $0x8] sm:$0xff]   ;;  %v431_v2 = vld [vmem:[#allocation10 + $0x8] sm:$0xff]  }
  0x3e   :  { %394 = vmatprep.subr.bf16.mxu0 %v614_v0  ;;  %402 = vmatprep.subr.bf16.mxu1 %v614_v0  ;;  %v432_v3 = vld [vmem:[#allocation8] sm:$0xff]   ;;  %v433_v4 = vld [vmem:[#allocation10] sm:$0xff]   ;;  %v434_v5 = vld [vmem:[#allocation2] sm:$0xff]   ;;  %vm121_vm1 = vcmask 261120   ;;  %vm290_vm2 = vcmask 257024   ;;  %s616_s2 = smov [#allocation12]  }
  0x3f   :  { %398 = vmatprep.mubr.msk.bf16.mxu0 %vm615_vm0, %v614_v0  ;;  %406 = vmatprep.mubr.msk.bf16.mxu1 %vm615_vm0, %v614_v0  ;;  %v435_v6 = vld [vmem:[#allocation5] sm:$0xff]   ;;  %v436_v7 = vld [vmem:[#allocation7] sm:$0xff]   ;;  %s330_s4 = sshll.u32 %s616_s2, 4  ;;  %s617_s25 = smov [#allocation11]   ;;  %s331_s4 = int_to_ptr.vmem [resolvable:$true] %s330_s4 }
  0x40   :  { %395 = vmatpush3.bf16.msra.mxu0 %v430_v1  ;;  %403 = vmatpush3.bf16.msra.mxu1 %v431_v2  ;;  %s318_s26 = sshll.u32 %s617_s25, 4  ;;  %s618_s27 = smov [#allocation14]   ;;  %s319_s26 = int_to_ptr.vmem [resolvable:$true] %s318_s26 }
  0x41   :  { %396 = vmatprep.subr.bf16.mxu0 %v614_v0  ;;  %404 = vmatprep.subr.bf16.mxu1 %v614_v0  ;;  %s342_s28 = sshll.u32 %s618_s27, 4  ;;  %s537_s8 = scalar_lea.vmem %s331_s4, 128  ;;  %s343_s28 = int_to_ptr.vmem [resolvable:$true] %s342_s28 }
  0x42   :  { %p538_p11 = scmp.ne.s32.totalorder %s331_s4, %s537_s8  ;;  %p542_p12 = scmp.lt.s32.totalorder %s331_s4, %s331_s4 }
  0x43   :  { %p543_p13 = scmp.lt.s32.totalorder %s537_s8, %s537_s8 }
  0x44   :  { %397 = vmatpush3.bf16.msra.mxu0 %v432_v3  ;;  %405 = vmatpush3.bf16.msra.mxu1 %v433_v4 }
  0x45   :  { %410 = vmatprep.subr.bf16.mxu0 %v614_v0  ;;  %p544_p0 = por %p543_p13, %p542_p12 }
  0x47   :  { %399 = vmatmul.mubr.msk.bf16.vlgmr.msra.gmra.mxu0 %vm121_vm1, %v434_v5  ;;  %407 = vmatmul.mubr.msk.bf16.vlgmr.msra.gmra.mxu1 %vm121_vm1, %v435_v6  ;;  %p545_p1 = pnand %p544_p0, %p538_p11 }
  0x48   :  { %411 = vmatpush3.bf16.msra.mxu0 %v431_v2  ;;  %414 = vmatprep.mubr.msk.bf16.mxu0 %vm615_vm0, %v614_v0 }
  0x49   :  { %412 = vmatprep.subr.bf16.mxu0 %v614_v0 }
  0x4c   :  { %413 = vmatpush3.bf16.msra.mxu0 %v433_v4 }
  0x4f   :  { %415 = vmatmul.mubr.msk.bf16.vlgmr.msra.gmra.mxu0 %vm121_vm1, %v436_v7 }
 0x107   :  { %v159_v8 = vpop.f32.mrf.mxu0  ;;  %v224_v10 = vpop.f32.mrf.mxu1 }
 0x108   :  { %v166_v9 = vmul.f32 0.35355338, %v159_v8  ;;  %v381_v12 = vpack.c.bf16 %v224_v10, %v224_v10 }
 0x109   :  { %v400_v11 = vpop.f32.mrf.mxu0  ;;  %v408_v14 = vpop.f32.mrf.mxu1 }
 0x10a   :  { %v379_v13 = vpack.c.bf16 %v166_v9, %v166_v9  ;;  %301 = vst.msk [vmem:[#allocation12] sm:$0xf] %vm290_vm2, %v381_v12 }
 0x10b   :  { %v162_v15 = vpop.f32.mrf.mxu0  ;;  %v227_v17 = vpop.f32.mrf.mxu1 }
 0x10c   :  { %v167_v16 = vmul.f32 0.35355338, %v162_v15  ;;  %291 = vst.msk [vmem:[#allocation11] sm:$0xf] %vm290_vm2, %v379_v13  ;;  %v382_v19 = vpack.c.bf16 %v227_v17, %v227_v17 }
 0x10d   :  { %v401_v18 = vpop.f32.mrf.mxu0  ;;  %v409_v21 = vpop.f32.mrf.mxu1 }
 0x10e   :  { %v380_v20 = vpack.c.bf16 %v167_v16, %v167_v16  ;;  %302 = vst.msk [vmem:[#allocation12 + $0x4] sm:$0xf] %vm290_vm2, %v382_v19 }
 0x10f   :  { %v275_v22 = vpop.f32.mrf.mxu0 }
 0x110   :  { %v383_v23 = vpack.c.bf16 %v275_v22, %v275_v22  ;;  %292 = vst.msk [vmem:[#allocation11 + $0x4] sm:$0xf] %vm290_vm2, %v380_v20 }
 0x111   :  { %548 = shalt.err (!%p545_p1)
}
 0x112   :  { %336 = dma.vmem_to_hbm [thread:$0]  %s331_s4, 128, %s722_s6, [#allocation13], %s609_s29, %s609_s29, %s610_s30   ;;  %v416_v24 = vpop.f32.mrf.mxu0 }
 0x113   :  { %s557_s11 = scalar_lea.vmem %s319_s26, 128  ;;  %p562_p3 = scmp.lt.s32.totalorder %s319_s26, %s319_s26 }
 0x114   :  { %p558_p2 = scmp.ne.s32.totalorder %s319_s26, %s557_s11  ;;  %p563_p4 = scmp.lt.s32.totalorder %s557_s11, %s557_s11 }
 0x116   :  { %p564_p5 = por %p563_p4, %p562_p3 }
 0x118   :  { %p565_p6 = pnand %p564_p5, %p558_p2 }
 0x11a   :  { %568 = shalt.err (!%p565_p6)
}
 0x11b   :  { %324 = dma.vmem_to_hbm [thread:$0]  %s319_s26, 128, %s721_s5, [#allocation4], %s609_s29, %s609_s29, %s610_s30   ;;  %311 = vst.msk [vmem:[#allocation14] sm:$0xf] %vm290_vm2, %v383_v23  ;;  %v278_v25 = vpop.f32.mrf.mxu0 }
 0x11c   :  { %v384_v26 = vpack.c.bf16 %v278_v25, %v278_v25  ;;  %s577_s6 = scalar_lea.vmem %s343_s28, 128  ;;  %p582_p8 = scmp.lt.s32.totalorder %s343_s28, %s343_s28 }
 0x11d   :  { %v417_v27 = vpop.f32.mrf.mxu0  ;;  %p578_p7 = scmp.ne.s32.totalorder %s343_s28, %s577_s6  ;;  %p583_p9 = scmp.lt.s32.totalorder %s577_s6, %s577_s6 }
 0x11e   :  { %312 = vst.msk [vmem:[#allocation14 + $0x4] sm:$0xf] %vm290_vm2, %v384_v26 }
 0x11f   :  { %p584_p10 = por %p583_p9, %p582_p8 }
 0x121   :  { %p585_p11 = pnand %p584_p10, %p578_p7 }
 0x123   :  { %588 = shalt.err (!%p585_p11)
}
 0x124   :  { %348 = dma.vmem_to_hbm [thread:$0]  %s343_s28, 128, %s723_s7, [#allocation13], %s609_s29, %s609_s29, %s610_s30  }
 0x125   :  { %603 = dma.done.wait [#allocation4], 128  }
 0x126   :  { %604 = vsyncadd [#allocation4], 4294967168 }
 0x127   :  { %605 = dma.done.wait [#allocation13], 256  }
 0x128   :  { %606 = vsyncadd [#allocation13], 4294967040 }
 0x129   :  { %358 = vsyncpa [#allocation3], 1 }
 0x12a   :  { %359 = vsyncpa [#allocation6], 1 }
 0x12b   :  { %360 = vsyncpa [#allocation9], 1 }
 0x12c   :  { %361 = vsyncpa [#allocation4], 1 }
 0x12d   :  { %362 = vsyncpa [#allocation13], 1 }

</bundles_post_ra>
